<compile_context>
chip_gen: v7x
topology: tpu7x:2x2x1
jax: 0.10.0
libtpu: 0.0.40
codegen_flags: <defaults>
</compile_context>

<pallas_src>
import functools

import jax
import jax.numpy as jnp
from jax.experimental import pallas as pl
from jax.experimental.pallas import tpu as pltpu


def _ffn_kernel(x_ref, w1_ref, b1_ref, w2_ref, b2_ref, o_ref):
    """One (block_m, d_model) row tile: x @ W1 + b1 -> ReLU -> @ W2 + b2."""
    x = x_ref[...]

    # linear1 (MXU, f32 accumulation) + bias + ReLU
    h = jnp.dot(x, w1_ref[...], preferred_element_type=jnp.float32)
    h = h + b1_ref[...].astype(jnp.float32)
    h = jnp.maximum(h, 0.0)

    # TODO(synk): training-mode dropout (p=drop_prob) would use pltpu.prng_seed
    # + pltpu.stateful_bernoulli; eval-mode dropout is the identity, which is
    # what is implemented here (cannot bit-match PyTorch's RNG anyway).

    # linear2 (MXU, f32 accumulation) + bias
    h = h.astype(w2_ref.dtype)
    out = jnp.dot(h, w2_ref[...], preferred_element_type=jnp.float32)
    out = out + b2_ref[...].astype(jnp.float32)

    o_ref[...] = out.astype(o_ref.dtype)


def _pick_block_m(m):
    """Largest row tile <= 512 that divides m and yields >= 2 grid steps."""
    for cand in (512, 256, 128, 64, 32, 16, 8):
        if m % cand == 0 and m // cand >= 2:
            return cand
    for cand in (512, 256, 128, 64, 32, 16, 8):
        if m % cand == 0:
            return cand
    return m  # tiny / odd M: single full-extent tile (still legal block shape)


def positionwise_feed_forward(x, w1, b1, w2, b2, *, drop_prob=0.1,
                              training=False, block_m=None):
    """Pallas equivalent of PositionwiseFeedForward.forward (eval mode).

    x:  (..., d_model)
    w1: (d_model, hidden)   b1: (hidden,)
    w2: (hidden, d_model)   b2: (d_model,)
    """
    del drop_prob, training  # dropout is identity in eval mode

    orig_shape = x.shape
    d_model = orig_shape[-1]
    hidden = w1.shape[1]
    assert w1.shape == (d_model, hidden)
    assert b1.shape == (hidden,)
    assert w2.shape == (hidden, d_model)
    assert b2.shape == (d_model,)

    # Collapse leading dims -> lane-dense 2D layout (rows x d_model).
    m = 1
    for s in orig_shape[:-1]:
        m *= s
    x2 = x.reshape(m, d_model)
    b1_2 = b1.reshape(1, hidden)
    b2_2 = b2.reshape(1, d_model)

    if block_m is None:
        block_m = _pick_block_m(m)
    grid = (pl.cdiv(m, block_m),)

    out2 = pl.pallas_call(
        _ffn_kernel,
        out_shape=jax.ShapeDtypeStruct((m, d_model), x.dtype),
        grid_spec=pl.GridSpec(
            grid=grid,
            in_specs=[
                pl.BlockSpec((block_m, d_model), lambda i: (i, 0)),  # x row tile
                pl.BlockSpec((d_model, hidden), lambda i: (0, 0)),   # W1 (resident)
                pl.BlockSpec((1, hidden), lambda i: (0, 0)),         # b1
                pl.BlockSpec((hidden, d_model), lambda i: (0, 0)),   # W2 (resident)
                pl.BlockSpec((1, d_model), lambda i: (0, 0)),        # b2
            ],
            out_specs=pl.BlockSpec((block_m, d_model), lambda i: (i, 0)),
        ),
        compiler_params=pltpu.CompilerParams(
            dimension_semantics=("parallel",),
            vmem_limit_bytes=64 << 20,
        ),
    )(x2, w1, b1_2, w2, b2_2)

    return out2.reshape(orig_shape)


def _reference(x, w1, b1, w2, b2):
    """Plain-JAX reference mirroring the PyTorch module (eval mode)."""
    h = jnp.maximum(jnp.dot(x, w1) + b1, 0.0)
    return jnp.dot(h, w2) + b2


if __name__ == "__main__":
    key = jax.random.PRNGKey(0)
    seq, batch, d_model, hidden = 8, 2, 32, 64

    k_x, k_w1, k_b1, k_w2, k_b2 = jax.random.split(key, 5)
    x = jax.random.normal(k_x, (seq, batch, d_model), dtype=jnp.float32)
    w1 = jax.random.normal(k_w1, (d_model, hidden), dtype=jnp.float32) * 0.1
    b1 = jax.random.normal(k_b1, (hidden,), dtype=jnp.float32) * 0.1
    w2 = jax.random.normal(k_w2, (hidden, d_model), dtype=jnp.float32) * 0.1
    b2 = jax.random.normal(k_b2, (d_model,), dtype=jnp.float32) * 0.1

    out = positionwise_feed_forward(x, w1, b1, w2, b2)
    out = jax.block_until_ready(out)

    ref = _reference(x, w1, b1, w2, b2)
    assert out.shape == (seq, batch, d_model)
    assert jnp.allclose(out, ref, atol=1e-4, rtol=1e-4), "mismatch vs reference"

    print("KERNEL_OK")
</pallas_src>

<mosaic_0001>
module attributes {stable_mosaic.version = 11 : i64} {
  func.func @_ffn_kernel(%arg0: i32, %arg1: memref<8x32xf32, #tpu.memory_space<vmem>>, %arg2: memref<32x64xf32, #tpu.memory_space<vmem>>, %arg3: memref<1x64xf32, #tpu.memory_space<vmem>>, %arg4: memref<64x32xf32, #tpu.memory_space<vmem>>, %arg5: memref<1x32xf32, #tpu.memory_space<vmem>>, %arg6: memref<8x32xf32, #tpu.memory_space<vmem>>) attributes {dimension_semantics = [#tpu.dimension_semantics<parallel>], iteration_bounds = array<i64: 2>, scalar_prefetch = 0 : i64, scratch_operands = 0 : i64, tpu.core_type = #tpu.core_type<tc>, window_params = [{transform_indices = @transform_0, window_bounds = array<i64: 8, 32>}, {pipeline_mode = #tpu.pipeline_mode<synchronous>, transform_indices = @transform_1, window_bounds = array<i64: 32, 64>}, {pipeline_mode = #tpu.pipeline_mode<synchronous>, transform_indices = @transform_2, window_bounds = array<i64: 1, 64>}, {pipeline_mode = #tpu.pipeline_mode<synchronous>, transform_indices = @transform_3, window_bounds = array<i64: 64, 32>}, {pipeline_mode = #tpu.pipeline_mode<synchronous>, transform_indices = @transform_4, window_bounds = array<i64: 1, 32>}, {transform_indices = @transform_5, window_bounds = array<i64: 8, 32>}]} {
    %c0 = arith.constant 0 : index
    %c0_0 = arith.constant 0 : index
    %0 = vector.load %arg1[%c0, %c0_0] : memref<8x32xf32, #tpu.memory_space<vmem>>, vector<8x32xf32>
    %c0_1 = arith.constant 0 : index
    %c0_2 = arith.constant 0 : index
    %1 = vector.load %arg2[%c0_1, %c0_2] : memref<32x64xf32, #tpu.memory_space<vmem>>, vector<32x64xf32>
    %cst = arith.constant dense<0.000000e+00> : vector<8x64xf32>
    %2 = tpu.matmul %0, %1, %cst {dimension_numbers = #tpu.dot_dimension_numbers<[1], [0], [0], [1], [0, 0, 1, 1], [], []>} : vector<8x32xf32>, vector<32x64xf32>, vector<8x64xf32> -> vector<8x64xf32>
    %c0_3 = arith.constant 0 : index
    %c0_4 = arith.constant 0 : index
    %3 = vector.load %arg3[%c0_3, %c0_4] : memref<1x64xf32, #tpu.memory_space<vmem>>, vector<1x64xf32>
    %4 = vector.broadcast %3 : vector<1x64xf32> to vector<8x64xf32>
    %5 = arith.addf %2, %4 : vector<8x64xf32>
    %cst_5 = arith.constant 0.000000e+00 : f32
    %6 = vector.broadcast %cst_5 : f32 to vector<8x64xf32>
    %7 = arith.maximumf %5, %6 : vector<8x64xf32>
    %c0_6 = arith.constant 0 : index
    %c0_7 = arith.constant 0 : index
    %8 = vector.load %arg4[%c0_6, %c0_7] : memref<64x32xf32, #tpu.memory_space<vmem>>, vector<64x32xf32>
    %cst_8 = arith.constant dense<0.000000e+00> : vector<8x32xf32>
    %9 = tpu.matmul %7, %8, %cst_8 {dimension_numbers = #tpu.dot_dimension_numbers<[1], [0], [0], [1], [0, 0, 1, 1], [], []>} : vector<8x64xf32>, vector<64x32xf32>, vector<8x32xf32> -> vector<8x32xf32>
    %c0_9 = arith.constant 0 : index
    %c0_10 = arith.constant 0 : index
    %10 = vector.load %arg5[%c0_9, %c0_10] : memref<1x32xf32, #tpu.memory_space<vmem>>, vector<1x32xf32>
    %11 = vector.broadcast %10 : vector<1x32xf32> to vector<8x32xf32>
    %12 = arith.addf %9, %11 : vector<8x32xf32>
    %c0_11 = arith.constant 0 : index
    %c0_12 = arith.constant 0 : index
    %13 = vector.load %arg6[%c0_11, %c0_12] : memref<8x32xf32, #tpu.memory_space<vmem>>, vector<8x32xf32>
    tpu.vector_store %arg6[%c0_11, %c0_12], %12 {strides = array<i32>} : memref<8x32xf32, #tpu.memory_space<vmem>>, vector<8x32xf32>,
    return
  }
  func.func @transform_0(%arg0: i32) -> (i32, i32) {
    %c0_i32 = arith.constant 0 : i32
    %c0_i32_0 = arith.constant 0 : i32
    return %arg0, %c0_i32 : i32, i32
  }
  func.func @transform_1(%arg0: i32) -> (i32, i32) {
    %c0_i32 = arith.constant 0 : i32
    %c0_i32_0 = arith.constant 0 : i32
    %c0_i32_1 = arith.constant 0 : i32
    return %c0_i32, %c0_i32_0 : i32, i32
  }
  func.func @transform_2(%arg0: i32) -> (i32, i32) {
    %c0_i32 = arith.constant 0 : i32
    %c0_i32_0 = arith.constant 0 : i32
    %c0_i32_1 = arith.constant 0 : i32
    return %c0_i32, %c0_i32_0 : i32, i32
  }
  func.func @transform_3(%arg0: i32) -> (i32, i32) {
    %c0_i32 = arith.constant 0 : i32
    %c0_i32_0 = arith.constant 0 : i32
    %c0_i32_1 = arith.constant 0 : i32
    return %c0_i32, %c0_i32_0 : i32, i32
  }
  func.func @transform_4(%arg0: i32) -> (i32, i32) {
    %c0_i32 = arith.constant 0 : i32
    %c0_i32_0 = arith.constant 0 : i32
    %c0_i32_1 = arith.constant 0 : i32
    return %c0_i32, %c0_i32_0 : i32, i32
  }
  func.func @transform_5(%arg0: i32) -> (i32, i32) {
    %c0_i32 = arith.constant 0 : i32
    %c0_i32_0 = arith.constant 0 : i32
    return %arg0, %c0_i32 : i32, i32
  }
}

</mosaic_0001>

<bundles_post_ra>
// kernel: tpu_custom_call.1
= control target key start
LH: loop header
LB: loop body
LE: loop exit
PB: predicated region body
PF: predicated region fallthrough
CT: control target
= control target key end

     0   :  { %10 = vsyncpa [#allocation3], 0  ;;  %s1320_s0 = inlined_call_operand.hbm [shape: f32[16,32], index: 0, kind: input, shape index: {}]   ;;  %s1321_s1 = inlined_call_operand.hbm [shape: f32[32,64], index: 1, kind: input, shape index: {}]   ;;  %s1322_s2 = inlined_call_operand.hbm [shape: f32[1,64], index: 2, kind: input, shape index: {}]   ;;  %s1323_s3 = inlined_call_operand.hbm [shape: f32[64,32], index: 3, kind: input, shape index: {}]   ;;  %s1324_s4 = inlined_call_operand.hbm [shape: f32[1,32], index: 4, kind: input, shape index: {}]   ;;  %s1325_s5 = inlined_call_operand.hbm [shape: f32[16,32], index: 5, kind: output, shape index: {}]  }
   0x1   :  { %12 = vsyncpa [#allocation3 + $0x1], 0 }
   0x2   :  { %13 = vsyncpa [#allocation6], 0 }
   0x3   :  { %14 = vsyncpa [#allocation9], 0 }
   0x4   :  { %15 = vsyncpa [#allocation4], 0 }
   0x5   :  { %17 = vsyncpa [#allocation4 + $0x1], 0  ;;  %s1030_s18 = smov 0   ;;  %s1032_s19 = smov 0  }
   0x6   :  { %s1034_s20 = smov 0   ;;  %s1036_s21 = smov 0  }
   0x7 LB: > { %s989_s22 = smov [#allocation5]   ;;  %s1051_s24 = sadd.s32 4294967295, %s987_s21   ;;  %s987_s21 = sphi %s1036_s21, %s1349_s21   ;;  %s983_s20 = sphi %s1034_s20, %s1348_s20   ;;  %s979_s19 = sphi %s1032_s19, %s1347_s19   ;;  %s975_s18 = sphi %s1030_s18, %s1346_s18  }
   0x8   : > { %s176_s23 = sshll.u32 %s989_s22, 4  ;;  %p594_p0 = scmp.ge.s32.totalorder %s987_s21, 1  ;;  %s1056_s23 = int_to_ptr.vmem [resolvable:$true] %s176_s23 }
   0x9   : > { %p1326_p1 = scmp.eq.s32.totalorder %s1051_s24, 0  ;;  %p164_p2 = scmp.lt.s32.totalorder %s987_s21, 3 }
   0xa   : > { %s990_s26 = smov [#allocation8]   ;;  %s991_s29 = smov [#allocation7]  }
   0xb   : > { %p1058_p3 = pnand %p594_p0, %p164_p2  ;;  %s200_s27 = sshll.u32 %s990_s26, 4  ;;  %s1071_s27 = int_to_ptr.vmem [resolvable:$true] %s200_s27 }
   0xc   : > { %s190_s30 = sshll.u32 %s991_s29, 4  ;;  %s771_s8 = scalar_lea.hbm %s1321_s1, 512  ;;  %s1073_s30 = int_to_ptr.vmem [resolvable:$true] %s190_s30 }
   0xd   : > { %s1329_s25 = scalar_select %p1058_p3, 1, 0 }
   0xe   : > { %p699_p5 = pneg %p1058_p3  ;;  %p772_p7 = scmp.ne.s32.totalorder %s1321_s1, %s771_s8 }
   0xf   : > { %p778_p11 = scmp.lt.u32.totalorder %s771_s8, %s1321_s1 }
  0x10   : > { %p1067_p6 = pnand %p699_p5, %p1326_p1 }
  0x12   : > { %p1083_p8 = pneg %p1067_p6 }
  0x14   : > { %p774_p9 = pnand %p1083_p8, %p772_p7 }
  0x16   : > { %p775_p10 = pneg %p774_p9 }
  0x18   : > { %p780_p12 = pnand %p778_p11, %p775_p10 }
  0x1a   : > { %783 = shalt.err (!%p780_p12)
}
  0x1b   : > { %s784_s14 = scalar_lea.vmem %s1056_s23, 512  ;;  %p792_p5 = scmp.lt.s32.totalorder %s1056_s23, %s1056_s23 }
  0x1c   : > { %p785_p13 = scmp.ne.s32.totalorder %s1056_s23, %s784_s14  ;;  %p793_p4 = scmp.lt.s32.totalorder %s784_s14, %s784_s14 }
  0x1e   : > { %p787_p0 = pnand %p785_p13, %p1083_p8  ;;  %p794_p7 = por %p793_p4, %p792_p5 }
  0x20   : > { %p788_p2 = pneg %p787_p0 }
  0x22   : > { %p795_p9 = pnand %p794_p7, %p788_p2 }
  0x24   : > { %798 = shalt.err (!%p795_p9)
}
  0x25   : > { %s992_s15 = smov 128   ;;  %s993_s16 = smov 8  }
  0x26   : > { %702 = dma.hbm_to_vmem [thread:$0]  (!%p1067_p6), %s1321_s1, 512, %s1056_s23, [#allocation6], %s992_s15, %s992_s15, %s993_s16  }
  0x27   : > { %s799_s6 = scalar_lea.hbm %s1323_s3, 1024 }
  0x28   : > { %p800_p4 = scmp.ne.s32.totalorder %s1323_s3, %s799_s6  ;;  %p806_p12 = scmp.lt.u32.totalorder %s799_s6, %s1323_s3 }
  0x2a   : > { %p802_p10 = pnand %p800_p4, %p1083_p8 }
  0x2c   : > { %p803_p11 = pneg %p802_p10 }
  0x2e   : > { %p808_p13 = pnand %p806_p12, %p803_p11 }
  0x30   : > { %811 = shalt.err (!%p808_p13)
}
  0x31   : > { %s812_s23 = scalar_lea.vmem %s1071_s27, 1024  ;;  %p820_p7 = scmp.lt.s32.totalorder %s1071_s27, %s1071_s27 }
  0x32   : > { %p813_p0 = scmp.ne.s32.totalorder %s1071_s27, %s812_s23  ;;  %p821_p9 = scmp.lt.s32.totalorder %s812_s23, %s812_s23 }
  0x34   : > { %p815_p2 = pnand %p813_p0, %p1083_p8  ;;  %p822_p4 = por %p821_p9, %p820_p7 }
  0x36   : > { %p816_p5 = pneg %p815_p2 }
  0x38   : > { %p823_p10 = pnand %p822_p4, %p816_p5 }
  0x3a   : > { %826 = shalt.err (!%p823_p10)
}
  0x3b   : > { %708 = dma.hbm_to_vmem [thread:$0]  (!%p1067_p6), %s1323_s3, 1024, %s1071_s27, [#allocation9], %s992_s15, %s992_s15, %s993_s16  }
  0x3c   : > { %s827_s22 = scalar_lea.hbm %s1322_s2, 16 }
  0x3d   : > { %p828_p11 = scmp.ne.s32.totalorder %s1322_s2, %s827_s22  ;;  %p834_p0 = scmp.lt.u32.totalorder %s827_s22, %s1322_s2 }
  0x3f   : > { %p830_p12 = pnand %p828_p11, %p1083_p8 }
  0x41   : > { %p831_p13 = pneg %p830_p12 }
  0x43   : > { %p836_p2 = pnand %p834_p0, %p831_p13 }
  0x45   : > { %839 = shalt.err (!%p836_p2)
}
  0x46   : > { %s840_s27 = scalar_lea.vmem %s1073_s30, 16  ;;  %s847_s15 = scalar_lea.vmem %s1073_s30, 32 }
  0x47   : > { %p841_p5 = scmp.ne.s32.totalorder %s1073_s30, %s840_s27  ;;  %p848_p4 = scmp.lt.s32.totalorder %s1073_s30, %s1073_s30 }
  0x48   : > { %p849_p10 = scmp.lt.s32.totalorder %s847_s15, %s840_s27 }
  0x49   : > { %p843_p7 = pnand %p841_p5, %p1083_p8 }
  0x4a   : > { %p850_p11 = por %p849_p10, %p848_p4 }
  0x4b   : > { %p844_p9 = pneg %p843_p7 }
  0x4d   : > { %p851_p12 = pnand %p850_p11, %p844_p9 }
  0x4f   : > { %854 = shalt.err (!%p851_p12)
}
  0x50   : > { %705 = dma.hbm_to_vmem [thread:$0]  (!%p1067_p6), %s1322_s2, 16, %s1073_s30, [#allocation6]  }
  0x51   : > { %s994_s9 = smov [#allocation10]   ;;  %s855_s13 = scalar_lea.hbm %s1324_s4, 16 }
  0x52   : > { %s214_s10 = sshll.u32 %s994_s9, 4  ;;  %p856_p13 = scmp.ne.s32.totalorder %s1324_s4, %s855_s13  ;;  %s215_s10 = int_to_ptr.vmem [resolvable:$true] %s214_s10 }
  0x53   : > { %p862_p5 = scmp.lt.u32.totalorder %s855_s13, %s1324_s4 }
  0x54   : > { %p858_p0 = pnand %p856_p13, %p1083_p8 }
  0x56   : > { %p859_p2 = pneg %p858_p0 }
  0x58   : > { %p864_p7 = pnand %p862_p5, %p859_p2 }
  0x5a   : > { %867 = shalt.err (!%p864_p7)
}
  0x5b   : > { %s868_s30 = scalar_lea.vmem %s215_s10, 16  ;;  %s875_s29 = scalar_lea.vmem %s215_s10, 32 }
  0x5c   : > { %p869_p9 = scmp.ne.s32.totalorder %s215_s10, %s868_s30  ;;  %p876_p11 = scmp.lt.s32.totalorder %s215_s10, %s215_s10 }
  0x5d   : > { %p877_p12 = scmp.lt.s32.totalorder %s875_s29, %s868_s30 }
  0x5e   : > { %p871_p4 = pnand %p869_p9, %p1083_p8 }
  0x5f   : > { %p878_p1 = por %p877_p12, %p876_p11 }
  0x60   : > { %p872_p10 = pneg %p871_p4 }
  0x62   : > { %p879_p3 = pnand %p878_p1, %p872_p10 }
  0x64   : > { %882 = shalt.err (!%p879_p3)
}
  0x65   : > { %711 = dma.hbm_to_vmem [thread:$0]  (!%p1067_p6), %s1324_s4, 16, %s215_s10, [#allocation9]  }
  0x66   : > { %s593_s11 = sadd.s32 4294967294, %s987_s21   ;;  %s1171_s28 = sadd.s32 1, %s987_s21  }
  0x67   : > { %s27_s27 = ssub.s32 %s987_s21, %s1171_s28  ;;  %s30_s15 = sadd.s32 1, %s983_s20 }
  0x68   : > { %p28_p1 = scmp.eq.s32.totalorder %s27_s27, 0  ;;  %p37_p3 = scmp.ne.s32.totalorder %s983_s20, %s979_s19 }
  0x69   : > { %p38_p8 = scmp.eq.s32.totalorder %s987_s21, 0  ;;  %p43_p13 = scmp.ne.s32.totalorder %s979_s19, %s975_s18 }
  0x6a   : > { %s1182_s16 = scalar_select %p28_p1, %s983_s20, %s30_s15  }
  0x6b   : > { %p1184_p0 = por %p38_p8, %p37_p3  ;;  %p1333_p2 = scmp.eq.s32.totalorder %s1051_s24, 0 }
  0x6c   : > { %p151_p5 = scmp.eq.s32.totalorder %s1051_s24, 1  ;;  %p157_p7 = scmp.eq.s32.totalorder %s593_s11, 1 }
  0x6d   : > { %p1190_p6 = por %p1333_p2, %p43_p13  ;;  %p724_p9 = scmp.lt.s32.totalorder %s987_s21, 2 }
  0x6e   : > { %s225_s10 = sand.u32 1, %s983_s20   ;;  %p1197_p4 = por %p151_p5, %p37_p3 }
  0x6f   : > { %p1201_p10 = por %p157_p7, %p43_p13  ;;  %s600_s13 = sshll.u32 %s225_s10, 3 }
  0x70   : > { %s1335_s23 = scalar_select %p1197_p4, 1, 0 }
  0x71   : > { %s1336_s12 = scalar_select %p1201_p10, 1, 0 }
  0x72   : > { %s601_s14 = sshll.u32 %s987_s21, 7  ;;  %s229_s30 = scalar_lea.vmem [#allocation2], %s600_s13 }
  0x73   : > { %s1209_s26 = scalar_lea.hbm %s1320_s0, %s601_s14  ;;  %s236_s29 = sshll.u32 %s229_s30, 4  ;;  %s1211_s29 = int_to_ptr.vmem [resolvable:$true] %s236_s29 }
  0x74   : > { %p1215_p11 = pnand %p724_p9, %p1184_p0  ;;  %s226_s7 = scalar_lea.sflag [#allocation3], %s225_s10 }
  0x75   : > { %s883_s11 = scalar_lea.hbm %s1209_s26, 128  ;;  %s888_s13 = scalar_lea.hbm %s1320_s0, 256 }
  0x76   : > { %p884_p12 = scmp.ne.s32.totalorder %s1209_s26, %s883_s11  ;;  %p885_p1 = pneg %p1215_p11 }
  0x77   : > { %p889_p13 = scmp.lt.u32.totalorder %s1209_s26, %s1320_s0  ;;  %p890_p0 = scmp.lt.u32.totalorder %s888_s13, %s883_s11 }
  0x78   : > { %p886_p3 = pnand %p885_p1, %p884_p12  ;;  %p892_p5 = scmp.lt.u32.totalorder %s883_s11, %s1209_s26 }
  0x79   : > { %p891_p2 = por %p890_p0, %p889_p13 }
  0x7a   : > { %p887_p8 = pneg %p886_p3 }
  0x7b   : > { %p893_p7 = por %p892_p5, %p891_p2 }
  0x7d   : > { %p894_p9 = pnand %p893_p7, %p887_p8 }
  0x7f   : > { %897 = shalt.err (!%p894_p9)
}
  0x80   : > { %s898_s10 = scalar_lea.vmem %s1211_s29, 128  ;;  %s995_s17 = smov [#allocation2]  }
  0x81   : > { %p899_p12 = scmp.ne.s32.totalorder %s1211_s29, %s898_s10  ;;  %s903_s22 = sshll.u32 %s995_s17, 4  ;;  %s904_s22 = int_to_ptr.vmem [resolvable:$false] %s903_s22 }
  0x82   : > { %s905_s30 = scalar_lea.vmem %s904_s22, 256  ;;  %p906_p4 = scmp.lt.s32.totalorder %s1211_s29, %s904_s22 }
  0x83   : > { %p901_p3 = pnand %p899_p12, %p885_p1  ;;  %p907_p13 = scmp.lt.s32.totalorder %s905_s30, %s898_s10 }
  0x85   : > { %p902_p10 = pneg %p901_p3  ;;  %p908_p0 = por %p907_p13, %p906_p4 }
  0x87   : > { %p909_p2 = pnand %p908_p0, %p902_p10 }
  0x89   : > { %912 = shalt.err (!%p909_p2)
}
  0x8a   : > { %715 = dma.hbm_to_vmem [thread:$0]  (!%p1215_p11), %s1209_s26, 128, %s1211_s29, %s226_s7  }
  0x8b   : > { %p1338_p8 = scmp.ne.s32.totalorder %s1329_s25, 0 }
  0x8c   : > { %s1247_s11 = sand.u32 (!%p1338_p8), 1, %s979_s19  }
  0x8d   : > { %245 = sbr.rel (%p1338_p8) target bundleno = 609 (0x261), region = 40  ;;  %s603_s27 = sshll.u32 (!%p1338_p8), %s1247_s11, 3 }
  0x8e   : > { %s248_s15 = scalar_lea.sflag (!%p1338_p8), [#allocation3], %s1247_s11  ;;  %s1253_s13 = scalar_lea.vmem (!%p1338_p8), [#allocation2], %s603_s27 }
  0x94   : > { %958 = dma.done.wait (%p1190_p6), %s248_s15, 128  }
  0x95   : > { %960 = vsyncadd (%p1190_p6), %s248_s15, 4294967168  ;;  %p1339_p4 = scmp.eq.s32.totalorder %s1051_s24, 0 }
  0x97   : > { %962 = dma.done.wait (%p1339_p4), [#allocation6], 528   ;;  %p1340_p10 = pmov %p1339_p4 }
  0x98   : > { %p1341_p11 = pmov %p1339_p4 }
  0x99   : > { %964 = vsyncadd (%p1340_p10), [#allocation6], 4294966768 }
  0x9a   : > { %966 = dma.done.wait (%p1341_p11), [#allocation9], 1040   ;;  %p1342_p1 = pmov %p1339_p4 }
  0x9b   : > { %v996_v0 = vmov 0.0|0.0   ;;  %vm997_vm0 = vmmov 0   ;;  %v998_v1 = vmov 0.0   ;;  %v295_v2 = vld [vmem:[#allocation5] sm:$0xff]  ;;  %v296_v3 = vld [vmem:[#allocation5 + $0x8] sm:$0xff]  ;;  %v297_v4 = vld [vmem:[#allocation5 + $0x10] sm:$0xff] }
  0x9c   : > { %968 = vsyncadd (%p1342_p1), [#allocation9], 4294966256  ;;  %661 = vmatprep.subr.bf16.mxu0 %v996_v0  ;;  %639 = vmatprep.mubr.msk.f32.mxu0 %vm997_vm0, %v998_v1  ;;  %v662_v5 = vpack.c.bf16 %v296_v3, %v295_v2  ;;  %v298_v6 = vld [vmem:[#allocation5 + $0x18] sm:$0xff]  ;;  %v381_v7 = vld [vmem:[#allocation8] sm:$0xff]  ;;  %vm306_vm1 = vcmask 261120   ;;  %vm396_vm2 = vcmask 523264  }
  0x9d   : > { %667 = vmatprep.subr.bf16.mxu1 %v996_v0  ;;  %658 = vmatprep.mubr.msk.f32.mxu1 %vm997_vm0, %v998_v1  ;;  %v382_v8 = vld [vmem:[#allocation8 + $0x8] sm:$0xff]  ;;  %v383_v9 = vld [vmem:[#allocation8 + $0x10] sm:$0xff]  ;;  %v384_v10 = vld [vmem:[#allocation8 + $0x18] sm:$0xff]  ;;  %v665_v11 = vpack.c.bf16 %v298_v6, %v297_v4  ;;  %s614_s25 = sshll.u32 %s1051_s24, 7  ;;  %s293_s9 = scalar_lea.vmem [#allocation11], %s603_s27 }
  0x9e   : > { %663 = vmatpush3.bf16.msra.mxu0 %v662_v5  ;;  %v668_v12 = vpack.c.bf16 %v382_v8, %v381_v7  ;;  %v671_v13 = vpack.c.bf16 %v384_v10, %v383_v9  ;;  %v385_v14 = vld [vmem:[#allocation8 + $0x20] sm:$0xff]  ;;  %v386_v15 = vld [vmem:[#allocation8 + $0x28] sm:$0xff]  ;;  %v387_v18 = vld [vmem:[#allocation8 + $0x30] sm:$0xff]  ;;  %s485_s26 = sshll.u32 %s293_s9, 4  ;;  %s1275_s7 = scalar_lea.hbm %s1325_s5, %s614_s25  ;;  %s1277_s26 = int_to_ptr.vmem [resolvable:$true] %s485_s26 }
  0x9f   : > { %664 = vmatprep.subr.bf16.mxu0 %v996_v0  ;;  %v294_v16 = vld [vmem:[%s1253_s13] sm:$0xff]  ;;  %v674_v17 = vpack.c.bf16 %v386_v15, %v385_v14  ;;  %v609_v21 = vld [vmem:[#allocation7] ss:$0 sm:$0xff]  ;;  %v611_v26 = vld [vmem:[#allocation10] ss:$0 sm:$0xff]  ;;  %s472_s8 = scalar_lea.sflag [#allocation4], %s1247_s11 }
  0xa0   : > { %669 = vmatpush3.bf16.msra.mxu1 %v668_v12  ;;  %v388_v19 = vld [vmem:[#allocation8 + $0x38] sm:$0xff]  ;;  %s913_s24 = scalar_lea.vmem %s1277_s26, 128  ;;  %p1343_p5 = scmp.ne.s32.totalorder %s1335_s23, 0 }
  0xa1   : > { %670 = vmatprep.subr.bf16.mxu1 %v996_v0  ;;  %v677_v20 = vpack.c.bf16 %v388_v19, %v387_v18  ;;  %p914_p6 = scmp.ne.s32.totalorder %s1277_s26, %s913_s24  ;;  %s999_s14 = smov [#allocation11]  }
  0xa2   : > { %666 = vmatpush3.bf16.msra.mxu0 %v665_v11  ;;  %s917_s10 = sshll.u32 %s999_s14, 4  ;;  %s918_s10 = int_to_ptr.vmem [resolvable:$false] %s917_s10 }
  0xa3   : > { %p915_p7 = pnand %p914_p6, %p1343_p5  ;;  %s919_s17 = scalar_lea.vmem %s918_s10, 256 }
  0xa4   : > { %672 = vmatpush3.bf16.msra.mxu1 %v671_v13  ;;  %p920_p12 = scmp.lt.s32.totalorder %s1277_s26, %s918_s10  ;;  %p921_p3 = scmp.lt.s32.totalorder %s919_s17, %s913_s24 }
  0xa5   : > { %640 = vmatmul.mubr.msk.f32.vlgmr.msra.gmra.mrb[0].mxu0 %vm306_vm1, %v294_v16  ;;  %673 = vmatprep.subr.bf16.mxu1 %v996_v0  ;;  %p916_p9 = pneg %p915_p7 }
  0xa6   : > { %p922_p13 = por %p921_p3, %p920_p12 }
  0xa8   : > { %675 = vmatpush3.bf16.msra.mxu1 %v674_v17  ;;  %p923_p0 = pnand %p922_p13, %p916_p9 }
  0xa9   : > { %676 = vmatprep.subr.bf16.mxu1 %v996_v0 }
  0xac   : > { %678 = vmatpush3.bf16.msra.mxu1 %v677_v20 }
 0x178   : > { %v376_v22 = vpop.f32.mrb[0].mxu0 }
 0x179   : > { %v377_v23 = vadd.f32 %v609_v21, %v376_v22  ;;  %v641_v24 = vpop.f32.mrb[1].mxu0 }
 0x17b   : > { %v380_v25 = vmax.f32 %v377_v23, 0.0 }
 0x17d   : > { %659 = vmatmul.mubr.msk.f32.vlgmr.msra.gmra.mrb[0].mxu1 %vm396_vm2, %v380_v25 }
 0x250   : > { %v466_v27 = vpop.f32.mrb[0].mxu1 }
 0x251   : > { %v467_v28 = vadd.f32 %v611_v26, %v466_v27  ;;  %v660_v29 = vpop.f32.mrb[1].mxu1 }
 0x253   : > { %470 = vst.msk [vmem:[%s293_s9] sm:$0xff] %vm306_vm1, %v467_v28 }
 0x254   : > { %926 = shalt.err (!%p923_p0)
}
 0x255   : > { %s927_s22 = scalar_lea.hbm %s1275_s7, 128  ;;  %s931_s27 = scalar_lea.hbm %s1325_s5, 256 }
 0x256   : > { %p928_p2 = scmp.ne.s32.totalorder %s1275_s7, %s927_s22  ;;  %p932_p10 = scmp.lt.u32.totalorder %s1275_s7, %s1325_s5 }
 0x257   : > { %p933_p11 = scmp.lt.u32.totalorder %s931_s27, %s927_s22  ;;  %p935_p6 = scmp.lt.u32.totalorder %s927_s22, %s1275_s7 }
 0x258   : > { %p929_p8 = pnand %p928_p2, %p1343_p5 }
 0x259   : > { %p934_p1 = por %p933_p11, %p932_p10 }
 0x25a   : > { %p930_p4 = pneg %p929_p8 }
 0x25b   : > { %p936_p7 = por %p935_p6, %p934_p1 }
 0x25d   : > { %p937_p9 = pnand %p936_p7, %p930_p4 }
 0x25f   : > { %940 = shalt.err (!%p937_p9)
}
 0x260   : > { %697 = dma.vmem_to_hbm [thread:$0]  (%p1343_p5), %s1277_s26, 128, %s1275_s7, %s472_s8  }
 0x261 PF: > { %s497_s25 = sand.u32 1, %s975_s18   ;;  %p1344_p12 = scmp.ne.s32.totalorder %s1336_s12, 0 }
 0x262   : > { %p1345_p3 = scmp.ge.s32.totalorder %s987_s21, 2  ;;  %s498_s9 = scalar_lea.sflag [#allocation4], %s497_s25 }
 0x264   : > { %p717_p13 = pnand %p1345_p3, %p1344_p12 }
 0x266   : > { %970 = dma.done.wait (!%p717_p13), %s498_s9, 128  }
 0x267   : > { %972 = vsyncadd (!%p717_p13), %s498_s9, 4294967168  ;;  %p20_p0 = scmp.ge.s32.totalorder %s1171_s28, 4   ;;  %s1346_s18 = smov %s979_s19 }
 0x268   : > { %s1347_s19 = smov %s983_s20  ;;  %s1348_s20 = smov %s1182_s16 }
 0x269   : > { %s1349_s21 = smov %s1171_s28  ;;  %22 = sbr.rel (!%p20_p0) target bundleno = 7 (0x7), region = 101 }
 0x270   :  { %503 = vsyncpa [#allocation3], 1 }
 0x271   :  { %505 = vsyncpa [#allocation3 + $0x1], 1 }
 0x272   :  { %506 = vsyncpa [#allocation6], 1 }
 0x273   :  { %507 = vsyncpa [#allocation9], 1 }
 0x274   :  { %508 = vsyncpa [#allocation4], 1 }
 0x275   :  { %510 = vsyncpa [#allocation4 + $0x1], 1 }

</bundles_post_ra>
